<compile_context>
chip_gen: v7x
topology: tpu7x:2x2x1
jax: 0.10.0
libtpu: 0.0.40
codegen_flags: <defaults>
</compile_context>

<pallas_src>
import functools

import jax
import jax.numpy as jnp
from jax.experimental import pallas as pl
from jax.experimental.pallas import tpu as pltpu


def _round_up(x, m):
    return ((x + m - 1) // m) * m


def _default_tp():
    """Points per grid step, chosen per TPU generation (VMEM per TensorCore)."""
    try:
        kind = jax.devices()[0].device_kind.lower()
    except Exception:
        return 1024
    if "v6" in kind:
        return 2048      # 128 MiB physical VMEM; raise scoped limit explicitly
    if "v5" in kind:
        return 1024      # keep merged f32 intermediate ~8 MiB
    if "7" in kind:
        return 512       # v7x: 64 MiB VMEM per TensorCore
    return 1024


def _res_name_kernel(x_ref, w1_ref, w2_ref, b2_ref, o_ref, *, bt, tp, c_out):
    """One grid step: a (bt, tp) slab of points -> running raw max into o_ref[0].

    Layer-2 bias and relu are deferred to the last point tile:
      max_n relu(z_n + b2) == relu(max_n z_n + b2)   (relu monotone, b2 const).
    """
    pi = pl.program_id(2)

    @pl.when(pi == 0)
    def _init():
        # Must be -inf (not 0) because the +b2/relu are deferred.
        o_ref[...] = jnp.full(o_ref.shape, -jnp.inf, o_ref.dtype)

    c_aug = x_ref.shape[-1]
    x = x_ref[...].reshape(bt * tp, c_aug)                       # bf16, merged slab

    # Layer 1: conv1+bn1 folded; bias rides the appended ones channel of x.
    h1 = jnp.dot(x, w1_ref[...], preferred_element_type=jnp.float32)
    h1 = jnp.maximum(h1, 0.0)

    # Layer 2 raw matmul (bias/relu deferred; no masking — padding is edge rows).
    z2 = jnp.dot(h1.astype(jnp.bfloat16), w2_ref[...],
                 preferred_element_type=jnp.float32)             # (bt*tp, c_out)

    tile_max = jnp.max(z2.reshape(bt, tp, c_out), axis=1)        # (bt, c_out)
    o_ref[0] = jnp.maximum(o_ref[0], tile_max)

    @pl.when(pi == pl.num_programs(2) - 1)
    def _finalize():
        o_ref[0] = jnp.maximum(o_ref[0] + b2_ref[...], 0.0)


def res_name_feature_transform_net_fwd(net, params, *, bt=8, tp=None):
    """net: (B, N, C_in) float32.  Returns (B, 256) float32.

    bt: batch rows per grid step (multiple of 8 -> sublane-dense output slabs;
        when B < 8, the padded rows are wasted MXU work but harmless).
    tp: points per grid step; defaults per TPU generation.
    """
    B, N, C_in = net.shape
    W1, B1, W2, B2 = params
    c_mid = W1.shape[1]   # 64
    c_out = W2.shape[1]   # 256
    c_aug = C_in + 1      # ones channel carries the layer-1 bias

    if tp is None:
        tp = _default_tp()
    tp = max(16, min(tp, _round_up(N, 16)))
    tp = _round_up(tp, 16)                 # bf16 sublane packing

    bt = max(8, (bt // 8) * 8)
    b_pad = _round_up(B, bt)
    b_tiles = b_pad // bt

    # If only one batch tile, split the point axis into 2 "parallel" groups so
    # v7x megacore has >= 2 units of parallel work; combine partial maxes below.
    n_tiles_total = -(-N // tp)
    n_splits = 2 if (b_tiles == 1 and n_tiles_total >= 2) else 1
    n_pad = _round_up(N, tp * n_splits)
    pt_per_split = n_pad // (tp * n_splits)

    # Augment with a ones channel (layer-1 bias fold), cast matmul operands to
    # bf16, and edge-pad: pad point rows are copies of real points (max is
    # unchanged), pad batch rows are sliced off at the end.
    ones = jnp.ones((B, N, 1), net.dtype)
    x = jnp.concatenate([net, ones], axis=-1).astype(jnp.bfloat16)
    if (b_pad, n_pad) != (B, N):
        x = jnp.pad(x, ((0, b_pad - B), (0, n_pad - N), (0, 0)), mode="edge")

    w1a = jnp.concatenate([W1, B1], axis=0).astype(jnp.bfloat16)   # (c_aug, c_mid)
    w2 = W2.astype(jnp.bfloat16)                                   # (c_mid, c_out)
    b2 = B2.astype(jnp.float32)                                    # (1, c_out)

    grid = (b_tiles, n_splits, pt_per_split)
    kernel = functools.partial(_res_name_kernel, bt=bt, tp=tp, c_out=c_out)

    # Explicit VMEM budget: double-buffered lane-padded (26->128) x block,
    # resident weights, f32 intermediates (h1 + h1_bf16 + z2), output slabs.
    x_block = bt * tp * 128 * 2
    inter = bt * tp * (c_mid * 4 + c_mid * 2 + c_out * 4)
    wbytes = (_round_up(c_aug, 16) * c_mid + c_mid * c_out) * 2 + 8 * c_out * 4
    vmem_limit = int(1.5 * (2 * x_block + inter + 2 * wbytes
                            + 2 * bt * c_out * 4)) + (4 << 20)
    vmem_limit = int(min(max(vmem_limit, 32 << 20), 96 << 20))

    out = pl.pallas_call(
        kernel,
        out_shape=jax.ShapeDtypeStruct((n_splits, b_pad, c_out), jnp.float32),
        grid_spec=pltpu.PrefetchScalarGridSpec(
            num_scalar_prefetch=0,
            grid=grid,
            in_specs=[
                pl.BlockSpec((bt, tp, c_aug),
                             lambda bi, si, pi: (bi, si * pt_per_split + pi, 0)),
                # Weights/bias: constant index map -> resident in VMEM, no re-DMA.
                pl.BlockSpec((c_aug, c_mid), lambda bi, si, pi: (0, 0)),
                pl.BlockSpec((c_mid, c_out), lambda bi, si, pi: (0, 0)),
                pl.BlockSpec((1, c_out), lambda bi, si, pi: (0, 0)),
            ],
            out_specs=pl.BlockSpec((1, bt, c_out),
                                   lambda bi, si, pi: (si, bi, 0)),
        ),
        compiler_params=pltpu.CompilerParams(
            dimension_semantics=("parallel", "parallel", "arbitrary"),
            vmem_limit_bytes=vmem_limit),
    )(x, w1a, w2, b2)

    out = out[0] if n_splits == 1 else jnp.max(out, axis=0)
    return out[:B]


def make_params(key, c_in=25, eps=1e-5):
    """Deterministic synthetic params: conv1/conv2 + BN running stats, BN-folded."""
    ks = jax.random.split(key, 12)

    def u(k, shape, bound):
        return jax.random.uniform(k, shape, jnp.float32, -bound, bound)

    # conv1: Conv1d(c_in, 64, 1)  -> weight (64, c_in), bias (64,)
    w1 = u(ks[0], (64, c_in), (1.0 / c_in) ** 0.5)
    b1 = u(ks[1], (64,), (1.0 / c_in) ** 0.5)
    g1 = 1.0 + 0.1 * jax.random.normal(ks[2], (64,), jnp.float32)
    be1 = 0.1 * jax.random.normal(ks[3], (64,), jnp.float32)
    m1 = 0.1 * jax.random.normal(ks[4], (64,), jnp.float32)
    v1 = jax.random.uniform(ks[5], (64,), jnp.float32, 0.5, 1.5)

    # conv2: Conv1d(64, 256, 1) -> weight (256, 64), bias (256,)
    w2 = u(ks[6], (256, 64), (1.0 / 64.0) ** 0.5)
    b2 = u(ks[7], (256,), (1.0 / 64.0) ** 0.5)
    g2 = 1.0 + 0.1 * jax.random.normal(ks[8], (256,), jnp.float32)
    be2 = 0.1 * jax.random.normal(ks[9], (256,), jnp.float32)
    m2 = 0.1 * jax.random.normal(ks[10], (256,), jnp.float32)
    v2 = jax.random.uniform(ks[11], (256,), jnp.float32, 0.5, 1.5)

    # Fold BN (eval mode) into the 1x1 convs.
    s1 = g1 / jnp.sqrt(v1 + eps)
    s2 = g2 / jnp.sqrt(v2 + eps)
    W1 = (w1 * s1[:, None]).T                       # (c_in, 64)
    B1 = ((b1 - m1) * s1 + be1)[None, :]            # (1, 64)
    W2 = (w2 * s2[:, None]).T                       # (64, 256)
    B2 = ((b2 - m2) * s2 + be2)[None, :]            # (1, 256)
    return (W1.astype(jnp.float32), B1.astype(jnp.float32),
            W2.astype(jnp.float32), B2.astype(jnp.float32))


def reference_f32(net, params):
    """Module semantics in full f32 (per-point bias/relu before the max)."""
    W1, B1, W2, B2 = params
    h1 = jnp.maximum(jnp.einsum("bnc,cd->bnd", net, W1) + B1, 0.0)
    h2 = jnp.maximum(jnp.einsum("bnc,cd->bnd", h1, W2) + B2, 0.0)
    return jnp.max(h2, axis=1)


def reference_bf16(net, params):
    """Module semantics with the kernel's exact precision path:
    bf16 matmul operands (layer-1 bias folded as a bf16 weight row, ones channel),
    f32 accumulation, layer-2 bias/relu applied after the point max."""
    W1, B1, W2, B2 = params
    ones = jnp.ones(net.shape[:-1] + (1,), net.dtype)
    x = jnp.concatenate([net, ones], axis=-1).astype(jnp.bfloat16)
    w1a = jnp.concatenate([W1, B1], axis=0).astype(jnp.bfloat16)
    h1 = jnp.einsum("bnc,cd->bnd", x, w1a,
                    preferred_element_type=jnp.float32)
    h1 = jnp.maximum(h1, 0.0)
    z2 = jnp.einsum("bnc,cd->bnd", h1.astype(jnp.bfloat16),
                    W2.astype(jnp.bfloat16),
                    preferred_element_type=jnp.float32)
    return jnp.maximum(jnp.max(z2, axis=1) + B2, 0.0)


def _check(net, params, **kw):
    out = jax.block_until_ready(res_name_feature_transform_net_fwd(net, params, **kw))
    assert out.shape == (net.shape[0], 256), out.shape
    # Tight check vs a reference that mimics the kernel's precision path.
    ref_lo = reference_bf16(net, params)
    assert jnp.allclose(out, ref_lo, atol=2e-3, rtol=2e-3), \
        float(jnp.max(jnp.abs(out - ref_lo)))
    # Loose sanity bound vs full-f32 module semantics (bf16 operand rounding).
    ref_hi = reference_f32(net, params)
    assert jnp.allclose(out, ref_hi, atol=2.5e-1, rtol=5e-2), \
        float(jnp.max(jnp.abs(out - ref_hi)))
    return out


if __name__ == "__main__":
    K = 25  # input channels (k=25)
    key = jax.random.PRNGKey(0)
    k_net, k_net2, k_par = jax.random.split(key, 3)
    params = make_params(k_par, c_in=K)

    # Primary small case: single grid step.
    net = jax.random.normal(k_net, (2, 16, K), dtype=jnp.float32)
    _check(net, params)

    # Second case: exercises multiple point tiles, the 2-way point split
    # (partial maxes combined in the wrapper), and edge padding (50 -> 64).
    net2 = jax.random.normal(k_net2, (2, 50, K), dtype=jnp.float32)
    _check(net2, params, tp=16)

    print("KERNEL_OK")
</pallas_src>

<mosaic_0001>
module attributes {stable_mosaic.version = 11 : i64} {
  func.func @_res_name_kernel(%arg0: i32, %arg1: i32, %arg2: i32, %arg3: memref<8x16x26xbf16, #tpu.memory_space<vmem>>, %arg4: memref<26x64xbf16, #tpu.memory_space<vmem>>, %arg5: memref<64x256xbf16, #tpu.memory_space<vmem>>, %arg6: memref<1x256xf32, #tpu.memory_space<vmem>>, %arg7: memref<1x8x256xf32, #tpu.memory_space<vmem>>) attributes {dimension_semantics = [#tpu.dimension_semantics<parallel>, #tpu.dimension_semantics<parallel>, #tpu.dimension_semantics<arbitrary>], iteration_bounds = array<i64: 1, 1, 1>, scalar_prefetch = 0 : i64, scratch_operands = 0 : i64, tpu.core_type = #tpu.core_type<tc>, window_params = [{transform_indices = @transform_0, window_bounds = array<i64: 8, 16, 26>}, {pipeline_mode = #tpu.pipeline_mode<synchronous>, transform_indices = @transform_1, window_bounds = array<i64: 26, 64>}, {pipeline_mode = #tpu.pipeline_mode<synchronous>, transform_indices = @transform_2, window_bounds = array<i64: 64, 256>}, {pipeline_mode = #tpu.pipeline_mode<synchronous>, transform_indices = @transform_3, window_bounds = array<i64: 1, 256>}, {transform_indices = @transform_4, window_bounds = array<i64: 1, 8, 256>}]} {
    %c0_i32 = arith.constant 0 : i32
    %0 = arith.cmpi eq, %arg2, %c0_i32 : i32
    %1 = arith.extui %0 : i1 to i32
    %c0_i32_0 = arith.constant 0 : i32
    %2 = arith.cmpi ne, %1, %c0_i32_0 : i32
    scf.if %2 {
      %cst_18 = arith.constant 0xFF800000 : f32
      %23 = vector.broadcast %cst_18 : f32 to vector<1x8x256xf32>
      %c0_19 = arith.constant 0 : index
      %c0_20 = arith.constant 0 : index
      %c0_21 = arith.constant 0 : index
      %24 = vector.load %arg7[%c0_19, %c0_20, %c0_21] : memref<1x8x256xf32, #tpu.memory_space<vmem>>, vector<1x8x256xf32>
      tpu.vector_store %arg7[%c0_19, %c0_20, %c0_21], %23 {strides = array<i32>} : memref<1x8x256xf32, #tpu.memory_space<vmem>>, vector<1x8x256xf32>,
    } else {
    }
    %c0 = arith.constant 0 : index
    %c0_1 = arith.constant 0 : index
    %c0_2 = arith.constant 0 : index
    %3 = vector.load %arg3[%c0, %c0_1, %c0_2] : memref<8x16x26xbf16, #tpu.memory_space<vmem>>, vector<8x16x26xbf16>
    %4 = vector.shape_cast %3 : vector<8x16x26xbf16> to vector<128x26xbf16>
    %c0_3 = arith.constant 0 : index
    %c0_4 = arith.constant 0 : index
    %5 = vector.load %arg4[%c0_3, %c0_4] : memref<26x64xbf16, #tpu.memory_space<vmem>>, vector<26x64xbf16>
    %cst = arith.constant dense<0.000000e+00> : vector<128x64xf32>
    %6 = tpu.matmul %4, %5, %cst {dimension_numbers = #tpu.dot_dimension_numbers<[1], [0], [0], [1], [0, 0, 1, 1], [], []>} : vector<128x26xbf16>, vector<26x64xbf16>, vector<128x64xf32> -> vector<128x64xf32>
    %cst_5 = arith.constant 0.000000e+00 : f32
    %7 = vector.broadcast %cst_5 : f32 to vector<128x64xf32>
    %8 = arith.maximumf %6, %7 : vector<128x64xf32>
    %9 = arith.truncf %8 : vector<128x64xf32> to vector<128x64xbf16>
    %c0_6 = arith.constant 0 : index
    %c0_7 = arith.constant 0 : index
    %10 = vector.load %arg5[%c0_6, %c0_7] : memref<64x256xbf16, #tpu.memory_space<vmem>>, vector<64x256xbf16>
    %cst_8 = arith.constant dense<0.000000e+00> : vector<128x256xf32>
    %11 = tpu.matmul %9, %10, %cst_8 {dimension_numbers = #tpu.dot_dimension_numbers<[1], [0], [0], [1], [0, 0, 1, 1], [], []>} : vector<128x64xbf16>, vector<64x256xbf16>, vector<128x256xf32> -> vector<128x256xf32>
    %12 = vector.shape_cast %11 : vector<128x256xf32> to vector<8x16x256xf32>
    %cst_9 = arith.constant dense<0xFF800000> : vector<8x256xf32>
    %13 = vector.multi_reduction <maximumf>, %12, %cst_9 [1] : vector<8x16x256xf32> to vector<8x256xf32>
    %c0_10 = arith.constant 0 : index
    %c0_11 = arith.constant 0 : index
    %c0_12 = arith.constant 0 : index
    %14 = vector.load %arg7[%c0_10, %c0_11, %c0_12] : memref<1x8x256xf32, #tpu.memory_space<vmem>>, vector<1x8x256xf32>
    %15 = vector.shape_cast %14 : vector<1x8x256xf32> to vector<8x256xf32>
    %16 = arith.maximumf %15, %13 : vector<8x256xf32>
    %c0_13 = arith.constant 0 : index
    %c0_14 = arith.constant 0 : index
    %c0_15 = arith.constant 0 : index
    %17 = vector.load %arg7[%c0_13, %c0_14, %c0_15] : memref<1x8x256xf32, #tpu.memory_space<vmem>>, vector<1x8x256xf32>
    %18 = vector.shape_cast %17 : vector<1x8x256xf32> to vector<8x256xf32>
    %19 = vector.shape_cast %16 : vector<8x256xf32> to vector<1x8x256xf32>
    tpu.vector_store %arg7[%c0_13, %c0_14, %c0_15], %19 {strides = array<i32>} : memref<1x8x256xf32, #tpu.memory_space<vmem>>, vector<1x8x256xf32>,
    %c0_i32_16 = arith.constant 0 : i32
    %20 = arith.cmpi eq, %arg2, %c0_i32_16 : i32
    %21 = arith.extui %20 : i1 to i32
    %c0_i32_17 = arith.constant 0 : i32
    %22 = arith.cmpi ne, %21, %c0_i32_17 : i32
    scf.if %22 {
      %c0_18 = arith.constant 0 : index
      %c0_19 = arith.constant 0 : index
      %c0_20 = arith.constant 0 : index
      %23 = vector.load %arg7[%c0_18, %c0_19, %c0_20] : memref<1x8x256xf32, #tpu.memory_space<vmem>>, vector<1x8x256xf32>
      %24 = vector.shape_cast %23 : vector<1x8x256xf32> to vector<8x256xf32>
      %c0_21 = arith.constant 0 : index
      %c0_22 = arith.constant 0 : index
      %25 = vector.load %arg6[%c0_21, %c0_22] : memref<1x256xf32, #tpu.memory_space<vmem>>, vector<1x256xf32>
      %26 = vector.broadcast %25 : vector<1x256xf32> to vector<8x256xf32>
      %27 = arith.addf %24, %26 : vector<8x256xf32>
      %cst_23 = arith.constant 0.000000e+00 : f32
      %28 = vector.broadcast %cst_23 : f32 to vector<8x256xf32>
      %29 = arith.maximumf %27, %28 : vector<8x256xf32>
      %c0_24 = arith.constant 0 : index
      %c0_25 = arith.constant 0 : index
      %c0_26 = arith.constant 0 : index
      %30 = vector.load %arg7[%c0_24, %c0_25, %c0_26] : memref<1x8x256xf32, #tpu.memory_space<vmem>>, vector<1x8x256xf32>
      %31 = vector.shape_cast %30 : vector<1x8x256xf32> to vector<8x256xf32>
      %32 = vector.shape_cast %29 : vector<8x256xf32> to vector<1x8x256xf32>
      tpu.vector_store %arg7[%c0_24, %c0_25, %c0_26], %32 {strides = array<i32>} : memref<1x8x256xf32, #tpu.memory_space<vmem>>, vector<1x8x256xf32>,
    } else {
    }
    return
  }
  func.func @transform_0(%arg0: i32, %arg1: i32, %arg2: i32) -> (i32, i32, i32) {
    %c1_i32 = arith.constant 1 : i32
    %0 = arith.muli %arg1, %c1_i32 : i32
    %1 = arith.addi %0, %arg2 : i32
    %c0_i32 = arith.constant 0 : i32
    %c0_i32_0 = arith.constant 0 : i32
    return %arg0, %1, %c0_i32 : i32, i32, i32
  }
  func.func @transform_1(%arg0: i32, %arg1: i32, %arg2: i32) -> (i32, i32) {
    %c0_i32 = arith.constant 0 : i32
    %c0_i32_0 = arith.constant 0 : i32
    %c0_i32_1 = arith.constant 0 : i32
    return %c0_i32, %c0_i32_0 : i32, i32
  }
  func.func @transform_2(%arg0: i32, %arg1: i32, %arg2: i32) -> (i32, i32) {
    %c0_i32 = arith.constant 0 : i32
    %c0_i32_0 = arith.constant 0 : i32
    %c0_i32_1 = arith.constant 0 : i32
    return %c0_i32, %c0_i32_0 : i32, i32
  }
  func.func @transform_3(%arg0: i32, %arg1: i32, %arg2: i32) -> (i32, i32) {
    %c0_i32 = arith.constant 0 : i32
    %c0_i32_0 = arith.constant 0 : i32
    %c0_i32_1 = arith.constant 0 : i32
    return %c0_i32, %c0_i32_0 : i32, i32
  }
  func.func @transform_4(%arg0: i32, %arg1: i32, %arg2: i32) -> (i32, i32, i32) {
    %c0_i32 = arith.constant 0 : i32
    %c0_i32_0 = arith.constant 0 : i32
    return %arg1, %arg0, %c0_i32 : i32, i32, i32
  }
}

</mosaic_0001>

<bundles_post_ra>
// kernel: tpu_custom_call.1
= control target key start
LH: loop header
LB: loop body
LE: loop exit
PB: predicated region body
PF: predicated region fallthrough
CT: control target
= control target key end

     0   :  { %9 = vsyncpa [#allocation3], 0  ;;  %s986_s0 = inlined_call_operand.hbm [shape: bf16[8,16,26], index: 0, kind: input, shape index: {}]   ;;  %s987_s1 = inlined_call_operand.hbm [shape: bf16[26,64], index: 1, kind: input, shape index: {}]   ;;  %s988_s2 = inlined_call_operand.hbm [shape: bf16[64,256], index: 2, kind: input, shape index: {}]   ;;  %s989_s3 = inlined_call_operand.vmem [shape: f32[1,256], index: 3, kind: input, shape index: {}]   ;;  %s990_s4 = inlined_call_operand.hbm [shape: f32[1,8,256], index: 4, kind: output, shape index: {}]  }
   0x1   :  { %10 = vsyncpa [#allocation6], 0 }
   0x2   :  { %11 = vsyncpa [#allocation4], 0  ;;  %s874_s15 = smov [#allocation5]   ;;  %s875_s17 = smov [#allocation2]  }
   0x3   :  { %s33_s16 = sshll.u32 %s874_s15, 4  ;;  %s21_s18 = sshll.u32 %s875_s17, 4  ;;  %s34_s16 = int_to_ptr.vmem [resolvable:$true] %s33_s16  ;;  %s908_s18 = int_to_ptr.vmem [resolvable:$true] %s21_s18 }
   0x4   :  { %s780_s21 = scalar_lea.hbm %s987_s1, 256 }
   0x5   :  { %p781_p0 = scmp.ne.s32.totalorder %s987_s1, %s780_s21  ;;  %p784_p1 = scmp.lt.u32.totalorder %s780_s21, %s987_s1 }
   0x7   :  { %p786_p2 = pnand %p784_p1, %p781_p0 }
   0x9   :  { %789 = shalt.err (!%p786_p2)
}
   0xa   :  { %s790_s26 = scalar_lea.vmem %s34_s16, 256  ;;  %p795_p4 = scmp.lt.s32.totalorder %s34_s16, %s34_s16 }
   0xb   :  { %p791_p3 = scmp.ne.s32.totalorder %s34_s16, %s790_s26  ;;  %p796_p5 = scmp.lt.s32.totalorder %s790_s26, %s790_s26 }
   0xd   :  { %p797_p6 = por %p796_p5, %p795_p4 }
   0xf   :  { %p798_p7 = pnand %p797_p6, %p791_p3 }
  0x11   :  { %801 = shalt.err (!%p798_p7)
}
  0x12   :  { %s876_s27 = smov 64   ;;  %s877_s28 = smov 4  }
  0x13   :  { %39 = dma.hbm_to_vmem [thread:$0]  %s987_s1, 256, %s34_s16, [#allocation6], %s876_s27, %s876_s27, %s877_s28  }
  0x14   :  { %s802_s7 = scalar_lea.hbm %s986_s0, 1024 }
  0x15   :  { %p803_p8 = scmp.ne.s32.totalorder %s986_s0, %s802_s7  ;;  %p806_p9 = scmp.lt.u32.totalorder %s802_s7, %s986_s0 }
  0x17   :  { %p808_p10 = pnand %p806_p9, %p803_p8 }
  0x19   :  { %811 = shalt.err (!%p808_p10)
}
  0x1a   :  { %s812_s12 = scalar_lea.vmem %s908_s18, 1024  ;;  %p817_p12 = scmp.lt.s32.totalorder %s908_s18, %s908_s18 }
  0x1b   :  { %p813_p11 = scmp.ne.s32.totalorder %s908_s18, %s812_s12  ;;  %p818_p13 = scmp.lt.s32.totalorder %s812_s12, %s812_s12 }
  0x1d   :  { %p819_p0 = por %p818_p13, %p817_p12 }
  0x1f   :  { %p820_p1 = pnand %p819_p0, %p813_p11 }
  0x21   :  { %823 = shalt.err (!%p820_p1)
}
  0x22   :  { %27 = dma.hbm_to_vmem [thread:$0]  %s986_s0, 1024, %s908_s18, [#allocation3], %s876_s27, %s876_s27, %s877_s28  }
  0x23   :  { %s878_s14 = smov [#allocation7]   ;;  %s824_s19 = scalar_lea.hbm %s988_s2, 1024 }
  0x24   :  { %s45_s15 = sshll.u32 %s878_s14, 4  ;;  %p825_p2 = scmp.ne.s32.totalorder %s988_s2, %s824_s19  ;;  %s46_s15 = int_to_ptr.vmem [resolvable:$true] %s45_s15 }
  0x25   :  { %p828_p3 = scmp.lt.u32.totalorder %s824_s19, %s988_s2 }
  0x27   :  { %p830_p4 = pnand %p828_p3, %p825_p2 }
  0x29   :  { %833 = shalt.err (!%p830_p4)
}
  0x2a   :  { %s834_s24 = scalar_lea.vmem %s46_s15, 1024  ;;  %p839_p6 = scmp.lt.s32.totalorder %s46_s15, %s46_s15 }
  0x2b   :  { %p835_p5 = scmp.ne.s32.totalorder %s46_s15, %s834_s24  ;;  %p840_p7 = scmp.lt.s32.totalorder %s834_s24, %s834_s24 }
  0x2d   :  { %p841_p8 = por %p840_p7, %p839_p6 }
  0x2f   :  { %p842_p9 = pnand %p841_p8, %p835_p5 }
  0x31   :  { %845 = shalt.err (!%p842_p9)
}
  0x32   :  { %s879_s0 = smov 128   ;;  %s880_s18 = smov 8  }
  0x33   :  { %51 = dma.hbm_to_vmem [thread:$0]  %s988_s2, 1024, %s46_s15, [#allocation6], %s879_s0, %s879_s0, %s880_s18  }
  0x34   :  { %868 = dma.done.wait [#allocation3], 1024  }
  0x35   :  { %869 = vsyncadd [#allocation3], 4294966272 }
  0x36   :  { %870 = dma.done.wait [#allocation6], 1280  }
  0x37   :  { %871 = vsyncadd [#allocation6], 4294966016  ;;  %vm168_vm0 = vcmask 1044480   ;;  %v758_v0 = vld [vmem:[#allocation5] sm:$0xff]   ;;  %vm143_vm1 = vcmask 211968   ;;  %v761_v4 = vld [vmem:[#allocation2 + $0x8] sm:$0xff]  }
  0x38   :  { %v759_v1 = vld [vmem:[#allocation5 + $0x8] sm:$0x1f]   ;;  %719 = vmatprep.subr.bf16.mxu0 %v758_v0  ;;  %v760_v2 = vld [vmem:[#allocation2] sm:$0xff]   ;;  %v762_v5 = vld [vmem:[#allocation2 + $0x10] sm:$0xff]   ;;  %v881_v19 = vmov 0   ;;  %vm341_vm2 = vcmask 523264  }
  0x39   :  { %720 = vmatpush3.bf16.msra.mxu0 %v758_v0  ;;  %v170_v3 = vsel %vm168_vm0, %v759_v1, 0  ;;  %723 = vmatprep.mubr.msk.bf16.mxu0 %vm143_vm1, %v760_v2  ;;  %v768_v6 = vld [vmem:[#allocation7] ss:$8 sps:$4 sm:$0xff]   ;;  %v770_v7 = vld [vmem:[#allocation7 + $0x4] ss:$8 sps:$4 sm:$0xff]   ;;  %v764_v10 = vld [vmem:[#allocation2 + $0x20] sm:$0xff]  }
  0x3a   :  { %747 = vmatprep.subr.msk.bf16.mxu0 %vm168_vm0, %v759_v1  ;;  %v773_v8 = vld [vmem:[#allocation7 + $0x14] ss:$8 sps:$4 sm:$0xff]   ;;  %739 = vmatprep.subr.bf16.mxu1 %v770_v7  ;;  %v763_v9 = vld [vmem:[#allocation2 + $0x18] sm:$0xff]   ;;  %v771_v11 = vld [vmem:[#allocation7 + $0x10] ss:$8 sps:$4 sm:$0xff]   ;;  %vm609_vm3 = vcmask 1041409  }
  0x3b   :  { %743 = vmatpush1.bf16.msra.mxu1 %v768_v6  ;;  %v765_v12 = vld [vmem:[#allocation2 + $0x28] sm:$0xff]   ;;  %v766_v13 = vld [vmem:[#allocation2 + $0x30] sm:$0xff]   ;;  %v767_v14 = vld [vmem:[#allocation2 + $0x38] sm:$0xff]   ;;  %418 = vmatprep.mubr.bf16.mxu1 %v881_v19  ;;  %vm611_vm4 = vcmask 1042434   ;;  %vm613_vm5 = vcmask 1043459   ;;  %vm615_vm6 = vcmask 1044484  }
  0x3c   :  { %740 = vmatprep.subr.bf16.mxu1 %v773_v8  ;;  %v776_v15 = vld [vmem:[#allocation7 + $0x24] ss:$8 sps:$4 sm:$0xff]   ;;  %v774_v16 = vld [vmem:[#allocation7 + $0x20] ss:$8 sps:$4 sm:$0xff]   ;;  %v779_v17 = vld [vmem:[#allocation7 + $0x34] ss:$8 sps:$4 sm:$0xff]  }
  0x3d   :  { %722 = vmatpush3.bf16.msra.mxu0 %v170_v3  ;;  %v777_v18 = vld [vmem:[#allocation7 + $0x30] ss:$8 sps:$4 sm:$0xff]   ;;  %vm617_vm7 = vcmask 1045509   ;;  %vm619_vm8 = vcmask 1046534   ;;  %vm621_vm9 = vcmask 1047559   ;;  %s882_s28 = smov [#allocation8]  }
  0x3e   :  { %366 = vmatprep.subr.bf16.mxu0 %v770_v7  ;;  %s665_s29 = sshll.u32 %s882_s28, 4  ;;  %s666_s29 = int_to_ptr.vmem [resolvable:$true] %s665_s29 }
  0x3f   :  { %744 = vmatpush1.bf16.msra.mxu1 %v771_v11  ;;  %s846_s30 = scalar_lea.vmem %s666_s29, 256  ;;  %p851_p11 = scmp.lt.s32.totalorder %s666_s29, %s666_s29 }
  0x40   :  { %724 = vmatmul.mubr.msk.bf16.vlgmr.msra.gmra.mrb[0].mxu0 %vm143_vm1, %v761_v4  ;;  %741 = vmatprep.subr.bf16.mxu1 %v776_v15  ;;  %p847_p10 = scmp.ne.s32.totalorder %s666_s29, %s846_s30  ;;  %p852_p12 = scmp.lt.s32.totalorder %s846_s30, %s846_s30 }
  0x41   :  { %727 = vmatprep.mubr.msk.bf16.mxu0 %vm143_vm1, %v762_v5  ;;  %367 = vmatpush1.bf16.msra.mxu0 %v768_v6 }
  0x42   :  { %368 = vmatprep.subr.bf16.mxu0 %v773_v8  ;;  %p853_p13 = por %p852_p12, %p851_p11 }
  0x43   :  { %745 = vmatpush1.bf16.msra.mxu1 %v774_v16 }
  0x44   :  { %742 = vmatprep.subr.bf16.mxu1 %v779_v17  ;;  %p854_p0 = pnand %p853_p13, %p847_p10 }
  0x45   :  { %369 = vmatpush1.bf16.msra.mxu0 %v771_v11 }
  0x46   :  { %370 = vmatprep.subr.bf16.mxu0 %v776_v15 }
  0x47   :  { %746 = vmatpush1.bf16.msra.mxu1 %v777_v18 }
  0x48   :  { %728 = vmatmul.mubr.msk.bf16.gmra.mrb[4].mxu0 %vm143_vm1, %v763_v9 }
  0x49   :  { %731 = vmatprep.mubr.msk.bf16.mxu0 %vm143_vm1, %v764_v10  ;;  %371 = vmatpush1.bf16.msra.mxu0 %v774_v16 }
  0x4a   :  { %372 = vmatprep.subr.bf16.mxu0 %v779_v17 }
  0x4d   :  { %373 = vmatpush1.bf16.msra.mxu0 %v777_v18 }
  0x50   :  { %732 = vmatmul.mubr.msk.bf16.gmra.mrb[8].mxu0 %vm143_vm1, %v765_v12 }
  0x51   :  { %735 = vmatprep.mubr.msk.bf16.mxu0 %vm143_vm1, %v766_v13 }
  0x58   :  { %736 = vmatmul.mubr.msk.bf16.gmra.mrb[12].mxu0 %vm143_vm1, %v767_v14 }
  0x59   :  { %398 = vmatprep.mubr.bf16.mxu0 %v881_v19 }
 0x113   :  { %v725_v20 = vpop.f32.mrb[0].mxu0 }
 0x114   :  { %v206_v21 = vpop.f32.mrb[1].mxu0  ;;  %v271_v23 = vmax.f32 %v725_v20, 0.0 }
 0x115   :  { %v726_v22 = vpop.f32.mrb[2].mxu0  ;;  %v269_v26 = vmax.f32 %v206_v21, 0.0 }
 0x116   :  { %v272_v24 = vmax.f32 %v726_v22, 0.0  ;;  %v209_v25 = vpop.f32.mrb[3].mxu0 }
 0x117   :  { %v270_v27 = vmax.f32 %v209_v25, 0.0 }
 0x118   :  { %v286_v28 = vpack.c.bf16 %v272_v24, %v271_v23 }
 0x119   :  { %v285_v29 = vpack.c.bf16 %v270_v27, %v269_v26 }
 0x11b   :  { %v729_v30 = vpop.f32.mrb[4].mxu0  ;;  %701 = vmatmul.mubr.msk.bf16.vlgmr.msra.gmra.mrb[16].mxu0 %vm341_vm2, %v285_v29 }
 0x11c   :  { %v222_v31 = vpop.f32.mrb[5].mxu0  ;;  %408 = vmatprep.mubr.bf16.mxu0 %v881_v19  ;;  %v275_v33 = vmax.f32 %v729_v30, 0.0 }
 0x11d   :  { %v730_v32 = vpop.f32.mrb[6].mxu0  ;;  %v273_v36 = vmax.f32 %v222_v31, 0.0 }
 0x11e   :  { %v276_v34 = vmax.f32 %v730_v32, 0.0  ;;  %v225_v35 = vpop.f32.mrb[7].mxu0 }
 0x11f   :  { %v274_v37 = vmax.f32 %v225_v35, 0.0 }
 0x120   :  { %v288_v38 = vpack.c.bf16 %v276_v34, %v275_v33 }
 0x121   :  { %v287_v39 = vpack.c.bf16 %v274_v37, %v273_v36 }
 0x123   :  { %702 = vmatmul.mubr.msk.bf16.gmra.mrb[20].mxu0 %vm341_vm2, %v286_v28  ;;  %703 = vmatmul.mubr.msk.bf16.vlgmr.msra.gmra.mrb[0].mxu1 %vm341_vm2, %v287_v39  ;;  %v733_v40 = vpop.f32.mrb[8].mxu0 }
 0x124   :  { %v279_v41 = vmax.f32 %v733_v40, 0.0  ;;  %v238_v42 = vpop.f32.mrb[9].mxu0  ;;  %428 = vmatprep.mubr.bf16.mxu1 %v881_v19 }
 0x125   :  { %v277_v43 = vmax.f32 %v238_v42, 0.0  ;;  %v734_v44 = vpop.f32.mrb[10].mxu0 }
 0x126   :  { %v280_v45 = vmax.f32 %v734_v44, 0.0  ;;  %v241_v46 = vpop.f32.mrb[11].mxu0 }
 0x127   :  { %v278_v47 = vmax.f32 %v241_v46, 0.0 }
 0x128   :  { %v290_v48 = vpack.c.bf16 %v280_v45, %v279_v41 }
 0x129   :  { %v289_v49 = vpack.c.bf16 %v278_v47, %v277_v43 }
 0x12b   :  { %704 = vmatmul.mubr.msk.bf16.gmra.mrb[4].mxu1 %vm341_vm2, %v288_v38  ;;  %v737_v50 = vpop.f32.mrb[12].mxu0 }
 0x12c   :  { %438 = vmatprep.mubr.bf16.mxu1 %v881_v19  ;;  %v283_v51 = vmax.f32 %v737_v50, 0.0  ;;  %v254_v52 = vpop.f32.mrb[13].mxu0 }
 0x12d   :  { %v281_v53 = vmax.f32 %v254_v52, 0.0  ;;  %v738_v54 = vpop.f32.mrb[14].mxu0 }
 0x12e   :  { %v284_v55 = vmax.f32 %v738_v54, 0.0  ;;  %v257_v56 = vpop.f32.mrb[15].mxu0 }
 0x12f   :  { %v282_v57 = vmax.f32 %v257_v56, 0.0 }
 0x130   :  { %v292_v58 = vpack.c.bf16 %v284_v55, %v283_v51 }
 0x131   :  { %v291_v59 = vpack.c.bf16 %v282_v57, %v281_v53 }
 0x133   :  { %705 = vmatmul.mubr.msk.bf16.gmra.mrb[8].mxu1 %vm341_vm2, %v289_v49 }
 0x134   :  { %448 = vmatprep.mubr.bf16.mxu1 %v881_v19 }
 0x13b   :  { %706 = vmatmul.mubr.msk.bf16.gmra.mrb[12].mxu1 %vm341_vm2, %v290_v48 }
 0x13c   :  { %458 = vmatprep.mubr.bf16.mxu1 %v881_v19 }
 0x143   :  { %707 = vmatmul.mubr.msk.bf16.gmra.mrb[16].mxu1 %vm341_vm2, %v291_v59 }
 0x144   :  { %468 = vmatprep.mubr.bf16.mxu1 %v881_v19 }
 0x14b   :  { %708 = vmatmul.mubr.msk.bf16.gmra.mrb[20].mxu1 %vm341_vm2, %v292_v58 }
 0x1ee   :  { %v400_v60 = vpop.f32.mrb[16].mxu0 }
 0x1ef   :  { %v402_v61 = vpop.f32.mrb[17].mxu0 }
 0x1f0   :  { %v404_v62 = vpop.f32.mrb[18].mxu0 }
 0x1f1   :  { %v479_v63 = vmax.f32 %v400_v60, %v404_v62  ;;  %v406_v0 = vpop.f32.mrb[19].mxu0 }
 0x1f2   :  { %v486_v1 = vmax.f32 %v402_v61, %v406_v0 }
 0x1f3   :  { %v480_v2 = vrot.slane %v479_v63, 4 }
 0x1f4   :  { %v487_v3 = vrot.slane %v486_v1, 4 }
 0x1f5   :  { %v481_v4 = vmax.f32 %v479_v63, %v480_v2 }
 0x1f6   :  { %v488_v5 = vmax.f32 %v486_v1, %v487_v3  ;;  %v410_v6 = vpop.f32.mrb[20].mxu0  ;;  %v420_v7 = vpop.f32.mrb[0].mxu1 }
 0x1f7   :  { %v412_v8 = vpop.f32.mrb[21].mxu0  ;;  %v422_v9 = vpop.f32.mrb[1].mxu1  ;;  %v482_v12 = vrot.slane %v481_v4, 2 }
 0x1f8   :  { %v414_v10 = vpop.f32.mrb[22].mxu0  ;;  %v424_v11 = vpop.f32.mrb[2].mxu1  ;;  %v489_v17 = vrot.slane %v488_v5, 2 }
 0x1f9   :  { %v493_v13 = vmax.f32 %v410_v6, %v414_v10  ;;  %v507_v14 = vmax.f32 %v420_v7, %v424_v11  ;;  %v416_v15 = vpop.f32.mrb[23].mxu0  ;;  %v426_v16 = vpop.f32.mrb[3].mxu1  ;;  %v483_v24 = vmax.f32 %v481_v4, %v482_v12 }
 0x1fa   :  { %v500_v18 = vmax.f32 %v412_v8, %v416_v15  ;;  %v514_v19 = vmax.f32 %v422_v9, %v426_v16  ;;  %v490_v27 = vmax.f32 %v488_v5, %v489_v17 }
 0x1fb   :  { %v494_v20 = vrot.slane %v493_v13, 4  ;;  %v508_v21 = vrot.slane %v507_v14, 4  ;;  %v484_v37 = vrot.slane %v483_v24, 1 }
 0x1fc   :  { %v501_v22 = vrot.slane %v500_v18, 4  ;;  %v515_v23 = vrot.slane %v514_v19, 4  ;;  %v491_v42 = vrot.slane %v490_v27, 1 }
 0x1fd   :  { %v495_v25 = vmax.f32 %v493_v13, %v494_v20  ;;  %v509_v26 = vmax.f32 %v507_v14, %v508_v21  ;;  %v485_v52 = vmax.f32 %v483_v24, %v484_v37 }
 0x1fe   :  { %v502_v28 = vmax.f32 %v500_v18, %v501_v22  ;;  %v516_v29 = vmax.f32 %v514_v19, %v515_v23  ;;  %v430_v30 = vpop.f32.mrb[4].mxu1  ;;  %v492_v56 = vmax.f32 %v490_v27, %v491_v42 }
 0x1ff   :  { %v496_v31 = vrot.slane %v495_v25, 2  ;;  %v510_v32 = vrot.slane %v509_v26, 2  ;;  %v432_v33 = vpop.f32.mrb[5].mxu1 }
 0x200   :  { %v503_v34 = vrot.slane %v502_v28, 2  ;;  %v517_v35 = vrot.slane %v516_v29, 2  ;;  %v434_v36 = vpop.f32.mrb[6].mxu1 }
 0x201   :  { %v497_v38 = vmax.f32 %v495_v25, %v496_v31  ;;  %v511_v39 = vmax.f32 %v509_v26, %v510_v32  ;;  %v521_v40 = vmax.f32 %v430_v30, %v434_v36  ;;  %v436_v41 = vpop.f32.mrb[7].mxu1 }
 0x202   :  { %v504_v43 = vmax.f32 %v502_v28, %v503_v34  ;;  %v518_v44 = vmax.f32 %v516_v29, %v517_v35  ;;  %v528_v45 = vmax.f32 %v432_v33, %v436_v41 }
 0x203   :  { %v498_v46 = vrot.slane %v497_v38, 1  ;;  %v512_v47 = vrot.slane %v511_v39, 1  ;;  %v522_v48 = vrot.slane %v521_v40, 4 }
 0x204   :  { %v505_v49 = vrot.slane %v504_v43, 1  ;;  %v519_v50 = vrot.slane %v518_v44, 1  ;;  %v529_v51 = vrot.slane %v528_v45, 4 }
 0x205   :  { %v499_v53 = vmax.f32 %v497_v38, %v498_v46  ;;  %v513_v54 = vmax.f32 %v511_v39, %v512_v47  ;;  %v523_v55 = vmax.f32 %v521_v40, %v522_v48 }
 0x206   :  { %v506_v57 = vmax.f32 %v504_v43, %v505_v49  ;;  %v520_v58 = vmax.f32 %v518_v44, %v519_v50  ;;  %v530_v59 = vmax.f32 %v528_v45, %v529_v51  ;;  %v440_v60 = vpop.f32.mrb[8].mxu1 }
 0x207   :  { %v610_v61 = vsel %vm609_vm3, %v499_v53, %v485_v52  ;;  %v524_v62 = vrot.slane %v523_v55, 2  ;;  %v442_v63 = vpop.f32.mrb[9].mxu1 }
 0x208   :  { %v612_v0 = vsel %vm611_vm4, %v513_v54, %v610_v61  ;;  %v623_v1 = vsel %vm609_vm3, %v506_v57, %v492_v56  ;;  %v531_v2 = vrot.slane %v530_v59, 2  ;;  %v444_v3 = vpop.f32.mrb[10].mxu1 }
 0x209   :  { %v624_v4 = vsel %vm611_vm4, %v520_v58, %v623_v1  ;;  %v525_v5 = vmax.f32 %v523_v55, %v524_v62  ;;  %v535_v6 = vmax.f32 %v440_v60, %v444_v3  ;;  %v446_v7 = vpop.f32.mrb[11].mxu1 }
 0x20a   :  { %v532_v8 = vmax.f32 %v530_v59, %v531_v2  ;;  %v542_v9 = vmax.f32 %v442_v63, %v446_v7 }
 0x20b   :  { %v526_v10 = vrot.slane %v525_v5, 1  ;;  %v536_v11 = vrot.slane %v535_v6, 4 }
 0x20c   :  { %v533_v12 = vrot.slane %v532_v8, 1  ;;  %v543_v13 = vrot.slane %v542_v9, 4 }
 0x20d   :  { %v527_v14 = vmax.f32 %v525_v5, %v526_v10  ;;  %v537_v15 = vmax.f32 %v535_v6, %v536_v11  ;;  %v643_v6 = vlaneseq }
 0x20e   :  { %v534_v16 = vmax.f32 %v532_v8, %v533_v12  ;;  %v544_v17 = vmax.f32 %v542_v9, %v543_v13  ;;  %v450_v18 = vpop.f32.mrb[12].mxu1 }
 0x20f   :  { %v614_v19 = vsel %vm613_vm5, %v527_v14, %v612_v0  ;;  %v538_v20 = vrot.slane %v537_v15, 2  ;;  %v452_v21 = vpop.f32.mrb[13].mxu1 }
 0x210   :  { %v625_v22 = vsel %vm613_vm5, %v534_v16, %v624_v4  ;;  %v545_v23 = vrot.slane %v544_v17, 2  ;;  %v454_v24 = vpop.f32.mrb[14].mxu1 }
 0x211   :  { %v539_v25 = vmax.f32 %v537_v15, %v538_v20  ;;  %v549_v26 = vmax.f32 %v450_v18, %v454_v24  ;;  %v456_v27 = vpop.f32.mrb[15].mxu1  ;;  %v644_v15 = vshrl.u32 %v643_v6, 7  ;;  %v641_v24 = vld [vmem:[%s989_s3] sm:$0x3] }
 0x212   :  { %v546_v28 = vmax.f32 %v544_v17, %v545_v23  ;;  %v556_v29 = vmax.f32 %v452_v21, %v456_v27 }
 0x213   :  { %v540_v30 = vrot.slane %v539_v25, 1  ;;  %v550_v31 = vrot.slane %v549_v26, 4 }
 0x214   :  { %v547_v32 = vrot.slane %v546_v28, 1  ;;  %v557_v33 = vrot.slane %v556_v29, 4 }
 0x215   :  { %v541_v34 = vmax.f32 %v539_v25, %v540_v30  ;;  %v551_v35 = vmax.f32 %v549_v26, %v550_v31  ;;  %v649_v25 = vsub.s32 1, %v644_v15 }
 0x216   :  { %v548_v36 = vmax.f32 %v546_v28, %v547_v32  ;;  %v558_v37 = vmax.f32 %v556_v29, %v557_v33  ;;  %v460_v38 = vpop.f32.mrb[16].mxu1 }
 0x217   :  { %v616_v39 = vsel %vm615_vm6, %v541_v34, %v614_v19  ;;  %v552_v40 = vrot.slane %v551_v35, 2  ;;  %v462_v41 = vpop.f32.mrb[17].mxu1  ;;  %v650_v31 = vrot.slane %v641_v24, %v649_v25 }
 0x218   :  { %v626_v42 = vsel %vm615_vm6, %v548_v36, %v625_v22  ;;  %v559_v43 = vrot.slane %v558_v37, 2  ;;  %v464_v44 = vpop.f32.mrb[18].mxu1  ;;  %v645_v22 = vsub.s32 0, %v644_v15 }
 0x219   :  { %v553_v45 = vmax.f32 %v551_v35, %v552_v40  ;;  %v563_v46 = vmax.f32 %v460_v38, %v464_v44  ;;  %v466_v47 = vpop.f32.mrb[19].mxu1 }
 0x21a   :  { %v560_v48 = vmax.f32 %v558_v37, %v559_v43  ;;  %v570_v49 = vmax.f32 %v462_v41, %v466_v47  ;;  %v646_v29 = vrot.slane %v641_v24, %v645_v22 }
 0x21b   :  { %v554_v50 = vrot.slane %v553_v45, 1  ;;  %v564_v51 = vrot.slane %v563_v46, 4 }
 0x21c   :  { %v561_v52 = vrot.slane %v560_v48, 1  ;;  %v571_v53 = vrot.slane %v570_v49, 4 }
 0x21d   :  { %v555_v54 = vmax.f32 %v553_v45, %v554_v50  ;;  %v565_v55 = vmax.f32 %v563_v46, %v564_v51 }
 0x21e   :  { %v562_v56 = vmax.f32 %v560_v48, %v561_v52  ;;  %v572_v57 = vmax.f32 %v570_v49, %v571_v53  ;;  %v470_v58 = vpop.f32.mrb[20].mxu1 }
 0x21f   :  { %v618_v59 = vsel %vm617_vm7, %v555_v54, %v616_v39  ;;  %v566_v60 = vrot.slane %v565_v55, 2  ;;  %v472_v61 = vpop.f32.mrb[21].mxu1 }
 0x220   :  { %v627_v62 = vsel %vm617_vm7, %v562_v56, %v626_v42  ;;  %v573_v63 = vrot.slane %v572_v57, 2  ;;  %v474_v0 = vpop.f32.mrb[22].mxu1 }
 0x221   :  { %v567_v1 = vmax.f32 %v565_v55, %v566_v60  ;;  %v577_v2 = vmax.f32 %v470_v58, %v474_v0  ;;  %v476_v3 = vpop.f32.mrb[23].mxu1 }
 0x222   :  { %v574_v4 = vmax.f32 %v572_v57, %v573_v63  ;;  %v584_v5 = vmax.f32 %v472_v61, %v476_v3 }
 0x223   :  { %v568_v7 = vrot.slane %v567_v1, 1  ;;  %v578_v8 = vrot.slane %v577_v2, 4 }
 0x224   :  { %v575_v9 = vrot.slane %v574_v4, 1  ;;  %v585_v10 = vrot.slane %v584_v5, 4 }
 0x225   :  { %v569_v11 = vmax.f32 %v567_v1, %v568_v7  ;;  %v579_v12 = vmax.f32 %v577_v2, %v578_v8 }
 0x226   :  { %v576_v13 = vmax.f32 %v574_v4, %v575_v9  ;;  %v586_v14 = vmax.f32 %v584_v5, %v585_v10 }
 0x227   :  { %v620_v16 = vsel %vm619_vm8, %v569_v11, %v618_v59  ;;  %v580_v17 = vrot.slane %v579_v12, 2 }
 0x228   :  { %v628_v18 = vsel %vm619_vm8, %v576_v13, %v627_v62  ;;  %v587_v19 = vrot.slane %v586_v14, 2 }
 0x229   :  { %v581_v20 = vmax.f32 %v579_v12, %v580_v17 }
 0x22a   :  { %v588_v21 = vmax.f32 %v586_v14, %v587_v19 }
 0x22b   :  { %v582_v23 = vrot.slane %v581_v20, 1 }
 0x22c   :  { %v589_v26 = vrot.slane %v588_v21, 1 }
 0x22d   :  { %v583_v27 = vmax.f32 %v581_v20, %v582_v23 }
 0x22e   :  { %v590_v28 = vmax.f32 %v588_v21, %v589_v26 }
 0x22f   :  { %v622_v30 = vsel %vm621_vm9, %v583_v27, %v620_v16 }
 0x230   :  { %v629_v32 = vsel %vm621_vm9, %v590_v28, %v628_v18  ;;  %v653_v33 = vadd.f32 %v646_v29, %v622_v30 }
 0x231   :  { %v654_v34 = vadd.f32 %v650_v31, %v629_v32 }
 0x232   :  { %v655_v35 = vmax.f32 %v653_v33, 0.0 }
 0x233   :  { %v656_v36 = vmax.f32 %v654_v34, 0.0 }
 0x234   :  { %657 = vst [vmem:[#allocation8] sm:$0xff] %v655_v35 }
 0x235   :  { %658 = vst [vmem:[#allocation8 + $0x8] sm:$0xff] %v656_v36 }
 0x236   :  { %857 = shalt.err (!%p854_p0)
}
 0x237   :  { %s858_s6 = scalar_lea.hbm %s990_s4, 256 }
 0x238   :  { %p859_p1 = scmp.ne.s32.totalorder %s990_s4, %s858_s6  ;;  %p862_p2 = scmp.lt.u32.totalorder %s858_s6, %s990_s4 }
 0x23a   :  { %p864_p3 = pnand %p862_p2, %p859_p1 }
 0x23c   :  { %867 = shalt.err (!%p864_p3)
}
 0x23d   :  { %668 = dma.vmem_to_hbm [thread:$0]  %s666_s29, 256, %s990_s4, [#allocation4]  }
 0x23e   :  { %872 = dma.done.wait [#allocation4], 256  }
 0x23f   :  { %873 = vsyncadd [#allocation4], 4294967040 }
 0x240   :  { %672 = vsyncpa [#allocation3], 1 }
 0x241   :  { %673 = vsyncpa [#allocation6], 1 }
 0x242   :  { %674 = vsyncpa [#allocation4], 1 }

</bundles_post_ra>
